<compile_context>
chip_gen: v7x
topology: tpu7x:2x2x1
jax: 0.10.0
libtpu: 0.0.40
codegen_flags: <defaults>
</compile_context>

<pallas_src>
import functools
import math

import jax
import jax.numpy as jnp
from jax.experimental import pallas as pl
from jax.experimental.pallas import tpu as pltpu

_LANE = 128      # last-dim (lane) granule
_SUBLANE = 8     # second-to-last (sublane) granule


def _identity(x):
    return x


def _round_up(n, m):
    return ((n + m - 1) // m) * m


# ----------------------------------------------------------------------------
# Fused multi-layer kernel: h = act_l(h @ W_l + b_l) for all layers, in VMEM.
# refs = (x_ref, w0_ref, b0_ref, w1_ref, b1_ref, ..., o_ref)
# ----------------------------------------------------------------------------
def _fused_mlp_kernel(*refs, activations):
    n_layers = len(activations)
    x_ref = refs[0]
    o_ref = refs[1 + 2 * n_layers]

    h = x_ref[...].astype(jnp.float32)
    for l in range(n_layers):
        w = refs[1 + 2 * l][...]        # (in, out)  hidden dims zero-padded
        b = refs[2 + 2 * l][...]        # (1, out)   zero-padded, f32
        if w.dtype != jnp.float32:
            h = h.astype(w.dtype)       # opt-in bf16 MXU path
        h = jnp.dot(h, w, preferred_element_type=jnp.float32)
        h = h + b.astype(jnp.float32)
        h = activations[l](h)           # elementwise math stays in f32
    o_ref[...] = h.astype(o_ref.dtype)


# ----------------------------------------------------------------------------
# Parameter init (mirrors nn.Linear default U(-1/sqrt(in), 1/sqrt(in)))
# ----------------------------------------------------------------------------
def init_explicit_mlp_params(key, input_length, output_length, hidden_lengths):
    lengths = [input_length] + list(hidden_lengths) + [output_length]
    params = []
    for l in range(len(lengths) - 1):
        fan_in, fan_out = lengths[l], lengths[l + 1]
        key, kw, kb = jax.random.split(key, 3)
        bound = 1.0 / math.sqrt(fan_in)
        # Stored already transposed: (in, out), so the kernel does x @ W_t + b.
        w_t = jax.random.uniform(
            kw, (fan_in, fan_out), jnp.float32, minval=-bound, maxval=bound
        )
        b = jax.random.uniform(
            kb, (1, fan_out), jnp.float32, minval=-bound, maxval=bound
        )
        params.append((w_t, b))
    return params


def prepare_padded_params(params, weight_dtype=jnp.float32):
    """Zero-pad HIDDEN feature dims to 128; keep the first layer's input dim
    and the last layer's output dim unpadded so the activation stream needs
    no feature-dim pad/slice in HBM.  Done once, outside the hot path.

    weight_dtype=jnp.bfloat16 halves weight VMEM/HBM traffic and enables the
    bf16-native MXU rate (accumulation stays f32); numerics then differ
    slightly from the f32 reference, so it is opt-in.
    """
    n = len(params)
    padded = []
    for l, (w_t, b) in enumerate(params):
        fi, fo = w_t.shape
        fi_p = fi if l == 0 else _round_up(fi, _LANE)
        fo_p = fo if l == n - 1 else _round_up(fo, _LANE)
        w_p = jnp.zeros((fi_p, fo_p), jnp.float32).at[:fi, :fo].set(w_t)
        w_p = w_p.astype(weight_dtype)
        b_p = jnp.zeros((1, fo_p), jnp.float32).at[:, :fo].set(b.reshape(1, fo))
        padded.append((w_p, b_p))
    out_features = params[-1][0].shape[1]
    return padded, out_features


def _choose_batch_tiling(B):
    """Pick (tile_b, padded_B).  Keeps round-up waste small and forces >= 2
    grid steps for B > 256 so both v7x TensorCores get work."""
    b8 = _round_up(max(B, 1), _SUBLANE)
    if B <= 256:
        return b8, b8
    candidates = (1024, 512, 256, 128, 64, 32, 16, 8) if B > 2048 \
        else (256, 128, 64, 32, 16, 8)
    for t in candidates:
        bp = _round_up(B, t)
        if bp // t < 2:
            continue
        if bp - B <= max(B // 8, _SUBLANE):
            return t, bp
    return _SUBLANE, b8


# ----------------------------------------------------------------------------
# Forward pass: one pallas_call for the whole MLP.
# ----------------------------------------------------------------------------
def explicit_mlp_forward(
    x,
    padded_params,
    out_features,
    intermediate_activation=_identity,   # matches nn.Identity default
    output_activation=_identity,          # matches nn.Identity default
):
    B, fin = x.shape
    n_layers = len(padded_params)
    assert padded_params[0][0].shape[0] == fin, "first-layer in-dim must match x"
    activations = tuple(
        intermediate_activation if l < n_layers - 1 else output_activation
        for l in range(n_layers)
    )

    tile_b, b_pad = _choose_batch_tiling(B)
    grid = (b_pad // tile_b,)

    # Pad the batch only when strictly needed (avoids an extra HBM pass).
    x_in = x if b_pad == B else jnp.zeros((b_pad, fin), x.dtype).at[:B, :].set(x)

    operands = [x_in]
    for w_p, b_p in padded_params:
        operands.append(w_p)
        operands.append(b_p)

    def build_specs(weight_pipeline_mode):
        specs = [pl.BlockSpec((tile_b, fin), lambda i: (i, 0))]
        for w_p, b_p in padded_params:
            # Grid-invariant operands: constant index_map, single-buffered.
            specs.append(pl.BlockSpec(w_p.shape, lambda i: (0, 0),
                                      pipeline_mode=weight_pipeline_mode))
            specs.append(pl.BlockSpec(b_p.shape, lambda i: (0, 0),
                                      pipeline_mode=weight_pipeline_mode))
        return specs

    kernel = functools.partial(_fused_mlp_kernel, activations=activations)
    out_shape = jax.ShapeDtypeStruct((b_pad, out_features), x.dtype)
    out_spec = pl.BlockSpec((tile_b, out_features), lambda i: (i, 0))

    # VMEM budget: resident weights/biases + double-buffered activation
    # stream + f32 intermediate headroom, clamped to [16 MiB, 64 MiB] (v7x
    # physical VMEM per TensorCore is 64 MiB).
    nbytes = lambda a: a.size * a.dtype.itemsize
    param_bytes = sum(nbytes(w) + nbytes(b) for w, b in padded_params)
    stream_bytes = 2 * tile_b * (fin + out_features) * x.dtype.itemsize
    widest = max(w.shape[1] for w, _ in padded_params)
    scratch_bytes = 2 * tile_b * widest * 4
    vmem_limit = 2 * (param_bytes + stream_bytes + scratch_bytes) + (4 << 20)
    vmem_limit = max(16 << 20, min(_round_up(vmem_limit, 1 << 20), 64 << 20))

    flops = 2 * b_pad * sum(w.shape[0] * w.shape[1] for w, _ in padded_params)
    bytes_accessed = (nbytes(x_in) + param_bytes
                      + b_pad * out_features * x.dtype.itemsize)
    cost = pl.CostEstimate(flops=flops, transcendentals=0,
                           bytes_accessed=bytes_accessed)

    def call(weight_pipeline_mode):
        return pl.pallas_call(
            kernel,
            out_shape=out_shape,
            grid=grid,
            in_specs=build_specs(weight_pipeline_mode),
            out_specs=out_spec,
            compiler_params=pltpu.CompilerParams(
                dimension_semantics=("parallel",),   # batch tiles shard across TCs
                vmem_limit_bytes=vmem_limit,
            ),
            cost_estimate=cost,
        )(*operands)

    try:
        y_p = call(pl.Buffered(1))   # single-buffer the constant weights/biases
    except Exception:
        y_p = call(None)             # fallback: default (double) buffering

    return y_p if b_pad == B else y_p[:B, :]


if __name__ == "__main__":
    # explicitMLP(inputLength=32, outputLength=16, hiddenLayersLengths=[64, 48])
    input_length = 32
    output_length = 16
    hidden_lengths = [64, 48]
    batch = 4

    key = jax.random.PRNGKey(0)
    key, kx = jax.random.split(key)
    x = jax.random.normal(kx, (batch, input_length), dtype=jnp.float32)

    params = init_explicit_mlp_params(
        key, input_length, output_length, hidden_lengths
    )
    padded_params, out_features = prepare_padded_params(params)

    out = explicit_mlp_forward(x, padded_params, out_features)
    out = jax.block_until_ready(out)

    # Reference in plain JAX on the unpadded params (identity activations).
    ref = x
    for w_t, b in params:
        ref = ref @ w_t + b

    assert out.shape == (batch, output_length)
    assert jnp.allclose(out, ref, atol=1e-5, rtol=1e-5)

    print("KERNEL_OK")
</pallas_src>

<mosaic_0001>
module attributes {stable_mosaic.version = 11 : i64} {
  func.func @_fused_mlp_kernel(%arg0: i32, %arg1: memref<8x32xf32, #tpu.memory_space<vmem>>, %arg2: memref<32x128xf32, #tpu.memory_space<vmem>>, %arg3: memref<1x128xf32, #tpu.memory_space<vmem>>, %arg4: memref<128x128xf32, #tpu.memory_space<vmem>>, %arg5: memref<1x128xf32, #tpu.memory_space<vmem>>, %arg6: memref<128x16xf32, #tpu.memory_space<vmem>>, %arg7: memref<1x16xf32, #tpu.memory_space<vmem>>, %arg8: memref<8x16xf32, #tpu.memory_space<vmem>>) attributes {dimension_semantics = [#tpu.dimension_semantics<parallel>], iteration_bounds = array<i64: 1>, scalar_prefetch = 0 : i64, scratch_operands = 0 : i64, tpu.core_type = #tpu.core_type<tc>, window_params = [{transform_indices = @transform_0, window_bounds = array<i64: 8, 32>}, {pipeline_mode = #tpu.pipeline_mode<synchronous>, transform_indices = @transform_1, window_bounds = array<i64: 32, 128>}, {pipeline_mode = #tpu.pipeline_mode<synchronous>, transform_indices = @transform_2, window_bounds = array<i64: 1, 128>}, {pipeline_mode = #tpu.pipeline_mode<synchronous>, transform_indices = @transform_3, window_bounds = array<i64: 128, 128>}, {pipeline_mode = #tpu.pipeline_mode<synchronous>, transform_indices = @transform_4, window_bounds = array<i64: 1, 128>}, {pipeline_mode = #tpu.pipeline_mode<synchronous>, transform_indices = @transform_5, window_bounds = array<i64: 128, 16>}, {pipeline_mode = #tpu.pipeline_mode<synchronous>, transform_indices = @transform_6, window_bounds = array<i64: 1, 16>}, {transform_indices = @transform_7, window_bounds = array<i64: 8, 16>}]} {
    %c0 = arith.constant 0 : index
    %c0_0 = arith.constant 0 : index
    %0 = vector.load %arg1[%c0, %c0_0] : memref<8x32xf32, #tpu.memory_space<vmem>>, vector<8x32xf32>
    %c0_1 = arith.constant 0 : index
    %c0_2 = arith.constant 0 : index
    %1 = vector.load %arg2[%c0_1, %c0_2] : memref<32x128xf32, #tpu.memory_space<vmem>>, vector<32x128xf32>
    %c0_3 = arith.constant 0 : index
    %c0_4 = arith.constant 0 : index
    %2 = vector.load %arg3[%c0_3, %c0_4] : memref<1x128xf32, #tpu.memory_space<vmem>>, vector<1x128xf32>
    %cst = arith.constant dense<0.000000e+00> : vector<8x128xf32>
    %3 = tpu.matmul %0, %1, %cst {dimension_numbers = #tpu.dot_dimension_numbers<[1], [0], [0], [1], [0, 0, 1, 1], [], []>} : vector<8x32xf32>, vector<32x128xf32>, vector<8x128xf32> -> vector<8x128xf32>
    %4 = vector.broadcast %2 : vector<1x128xf32> to vector<8x128xf32>
    %5 = arith.addf %3, %4 : vector<8x128xf32>
    %c0_5 = arith.constant 0 : index
    %c0_6 = arith.constant 0 : index
    %6 = vector.load %arg4[%c0_5, %c0_6] : memref<128x128xf32, #tpu.memory_space<vmem>>, vector<128x128xf32>
    %c0_7 = arith.constant 0 : index
    %c0_8 = arith.constant 0 : index
    %7 = vector.load %arg5[%c0_7, %c0_8] : memref<1x128xf32, #tpu.memory_space<vmem>>, vector<1x128xf32>
    %cst_9 = arith.constant dense<0.000000e+00> : vector<8x128xf32>
    %8 = tpu.matmul %5, %6, %cst_9 {dimension_numbers = #tpu.dot_dimension_numbers<[1], [0], [0], [1], [0, 0, 1, 1], [], []>} : vector<8x128xf32>, vector<128x128xf32>, vector<8x128xf32> -> vector<8x128xf32>
    %9 = vector.broadcast %7 : vector<1x128xf32> to vector<8x128xf32>
    %10 = arith.addf %8, %9 : vector<8x128xf32>
    %c0_10 = arith.constant 0 : index
    %c0_11 = arith.constant 0 : index
    %11 = vector.load %arg6[%c0_10, %c0_11] : memref<128x16xf32, #tpu.memory_space<vmem>>, vector<128x16xf32>
    %c0_12 = arith.constant 0 : index
    %c0_13 = arith.constant 0 : index
    %12 = vector.load %arg7[%c0_12, %c0_13] : memref<1x16xf32, #tpu.memory_space<vmem>>, vector<1x16xf32>
    %cst_14 = arith.constant dense<0.000000e+00> : vector<8x16xf32>
    %13 = tpu.matmul %10, %11, %cst_14 {dimension_numbers = #tpu.dot_dimension_numbers<[1], [0], [0], [1], [0, 0, 1, 1], [], []>} : vector<8x128xf32>, vector<128x16xf32>, vector<8x16xf32> -> vector<8x16xf32>
    %14 = vector.broadcast %12 : vector<1x16xf32> to vector<8x16xf32>
    %15 = arith.addf %13, %14 : vector<8x16xf32>
    %c0_15 = arith.constant 0 : index
    %c0_16 = arith.constant 0 : index
    %16 = vector.load %arg8[%c0_15, %c0_16] : memref<8x16xf32, #tpu.memory_space<vmem>>, vector<8x16xf32>
    tpu.vector_store %arg8[%c0_15, %c0_16], %15 {strides = array<i32>} : memref<8x16xf32, #tpu.memory_space<vmem>>, vector<8x16xf32>,
    return
  }
  func.func @transform_0(%arg0: i32) -> (i32, i32) {
    %c0_i32 = arith.constant 0 : i32
    %c0_i32_0 = arith.constant 0 : i32
    return %arg0, %c0_i32 : i32, i32
  }
  func.func @transform_1(%arg0: i32) -> (i32, i32) {
    %c0_i32 = arith.constant 0 : i32
    %c0_i32_0 = arith.constant 0 : i32
    %c0_i32_1 = arith.constant 0 : i32
    return %c0_i32, %c0_i32_0 : i32, i32
  }
  func.func @transform_2(%arg0: i32) -> (i32, i32) {
    %c0_i32 = arith.constant 0 : i32
    %c0_i32_0 = arith.constant 0 : i32
    %c0_i32_1 = arith.constant 0 : i32
    return %c0_i32, %c0_i32_0 : i32, i32
  }
  func.func @transform_3(%arg0: i32) -> (i32, i32) {
    %c0_i32 = arith.constant 0 : i32
    %c0_i32_0 = arith.constant 0 : i32
    %c0_i32_1 = arith.constant 0 : i32
    return %c0_i32, %c0_i32_0 : i32, i32
  }
  func.func @transform_4(%arg0: i32) -> (i32, i32) {
    %c0_i32 = arith.constant 0 : i32
    %c0_i32_0 = arith.constant 0 : i32
    %c0_i32_1 = arith.constant 0 : i32
    return %c0_i32, %c0_i32_0 : i32, i32
  }
  func.func @transform_5(%arg0: i32) -> (i32, i32) {
    %c0_i32 = arith.constant 0 : i32
    %c0_i32_0 = arith.constant 0 : i32
    %c0_i32_1 = arith.constant 0 : i32
    return %c0_i32, %c0_i32_0 : i32, i32
  }
  func.func @transform_6(%arg0: i32) -> (i32, i32) {
    %c0_i32 = arith.constant 0 : i32
    %c0_i32_0 = arith.constant 0 : i32
    %c0_i32_1 = arith.constant 0 : i32
    return %c0_i32, %c0_i32_0 : i32, i32
  }
  func.func @transform_7(%arg0: i32) -> (i32, i32) {
    %c0_i32 = arith.constant 0 : i32
    %c0_i32_0 = arith.constant 0 : i32
    return %arg0, %c0_i32 : i32, i32
  }
}

module attributes {stable_mosaic.version = 11 : i64} {
  func.func @_fused_mlp_kernel(%arg0: i32, %arg1: memref<8x32xf32, #tpu.memory_space<vmem>>, %arg2: memref<32x128xf32, #tpu.memory_space<vmem>>, %arg3: memref<1x128xf32, #tpu.memory_space<vmem>>, %arg4: memref<128x128xf32, #tpu.memory_space<vmem>>, %arg5: memref<1x128xf32, #tpu.memory_space<vmem>>, %arg6: memref<128x16xf32, #tpu.memory_space<vmem>>, %arg7: memref<1x16xf32, #tpu.memory_space<vmem>>, %arg8: memref<8x16xf32, #tpu.memory_space<vmem>>) attributes {dimension_semantics = [#tpu.dimension_semantics<parallel>], iteration_bounds = array<i64: 1>, scalar_prefetch = 0 : i64, scratch_operands = 0 : i64, tpu.core_type = #tpu.core_type<tc>, window_params = [{transform_indices = @transform_0, window_bounds = array<i64: 8, 32>}, {pipeline_mode = #tpu.pipeline_mode<synchronous>, transform_indices = @transform_1, window_bounds = array<i64: 32, 128>}, {pipeline_mode = #tpu.pipeline_mode<synchronous>, transform_indices = @transform_2, window_bounds = array<i64: 1, 128>}, {pipeline_mode = #tpu.pipeline_mode<synchronous>, transform_indices = @transform_3, window_bounds = array<i64: 128, 128>}, {pipeline_mode = #tpu.pipeline_mode<synchronous>, transform_indices = @transform_4, window_bounds = array<i64: 1, 128>}, {pipeline_mode = #tpu.pipeline_mode<synchronous>, transform_indices = @transform_5, window_bounds = array<i64: 128, 16>}, {pipeline_mode = #tpu.pipeline_mode<synchronous>, transform_indices = @transform_6, window_bounds = array<i64: 1, 16>}, {transform_indices = @transform_7, window_bounds = array<i64: 8, 16>}]} {
    %c0 = arith.constant 0 : index
    %c0_0 = arith.constant 0 : index
    %0 = vector.load %arg1[%c0, %c0_0] : memref<8x32xf32, #tpu.memory_space<vmem>>, vector<8x32xf32>
    %c0_1 = arith.constant 0 : index
    %c0_2 = arith.constant 0 : index
    %1 = vector.load %arg2[%c0_1, %c0_2] : memref<32x128xf32, #tpu.memory_space<vmem>>, vector<32x128xf32>
    %c0_3 = arith.constant 0 : index
    %c0_4 = arith.constant 0 : index
    %2 = vector.load %arg3[%c0_3, %c0_4] : memref<1x128xf32, #tpu.memory_space<vmem>>, vector<1x128xf32>
    %cst = arith.constant dense<0.000000e+00> : vector<8x128xf32>
    %3 = tpu.matmul %0, %1, %cst {dimension_numbers = #tpu.dot_dimension_numbers<[1], [0], [0], [1], [0, 0, 1, 1], [], []>} : vector<8x32xf32>, vector<32x128xf32>, vector<8x128xf32> -> vector<8x128xf32>
    %4 = vector.broadcast %2 : vector<1x128xf32> to vector<8x128xf32>
    %5 = arith.addf %3, %4 : vector<8x128xf32>
    %c0_5 = arith.constant 0 : index
    %c0_6 = arith.constant 0 : index
    %6 = vector.load %arg4[%c0_5, %c0_6] : memref<128x128xf32, #tpu.memory_space<vmem>>, vector<128x128xf32>
    %c0_7 = arith.constant 0 : index
    %c0_8 = arith.constant 0 : index
    %7 = vector.load %arg5[%c0_7, %c0_8] : memref<1x128xf32, #tpu.memory_space<vmem>>, vector<1x128xf32>
    %cst_9 = arith.constant dense<0.000000e+00> : vector<8x128xf32>
    %8 = tpu.matmul %5, %6, %cst_9 {dimension_numbers = #tpu.dot_dimension_numbers<[1], [0], [0], [1], [0, 0, 1, 1], [], []>} : vector<8x128xf32>, vector<128x128xf32>, vector<8x128xf32> -> vector<8x128xf32>
    %9 = vector.broadcast %7 : vector<1x128xf32> to vector<8x128xf32>
    %10 = arith.addf %8, %9 : vector<8x128xf32>
    %c0_10 = arith.constant 0 : index
    %c0_11 = arith.constant 0 : index
    %11 = vector.load %arg6[%c0_10, %c0_11] : memref<128x16xf32, #tpu.memory_space<vmem>>, vector<128x16xf32>
    %c0_12 = arith.constant 0 : index
    %c0_13 = arith.constant 0 : index
    %12 = vector.load %arg7[%c0_12, %c0_13] : memref<1x16xf32, #tpu.memory_space<vmem>>, vector<1x16xf32>
    %cst_14 = arith.constant dense<0.000000e+00> : vector<8x16xf32>
    %13 = tpu.matmul %10, %11, %cst_14 {dimension_numbers = #tpu.dot_dimension_numbers<[1], [0], [0], [1], [0, 0, 1, 1], [], []>} : vector<8x128xf32>, vector<128x16xf32>, vector<8x16xf32> -> vector<8x16xf32>
    %14 = vector.broadcast %12 : vector<1x16xf32> to vector<8x16xf32>
    %15 = arith.addf %13, %14 : vector<8x16xf32>
    %c0_15 = arith.constant 0 : index
    %c0_16 = arith.constant 0 : index
    %16 = vector.load %arg8[%c0_15, %c0_16] : memref<8x16xf32, #tpu.memory_space<vmem>>, vector<8x16xf32>
    tpu.vector_store %arg8[%c0_15, %c0_16], %15 {strides = array<i32>} : memref<8x16xf32, #tpu.memory_space<vmem>>, vector<8x16xf32>,
    return
  }
  func.func @transform_0(%arg0: i32) -> (i32, i32) {
    %c0_i32 = arith.constant 0 : i32
    %c0_i32_0 = arith.constant 0 : i32
    return %arg0, %c0_i32 : i32, i32
  }
  func.func @transform_1(%arg0: i32) -> (i32, i32) {
    %c0_i32 = arith.constant 0 : i32
    %c0_i32_0 = arith.constant 0 : i32
    %c0_i32_1 = arith.constant 0 : i32
    return %c0_i32, %c0_i32_0 : i32, i32
  }
  func.func @transform_2(%arg0: i32) -> (i32, i32) {
    %c0_i32 = arith.constant 0 : i32
    %c0_i32_0 = arith.constant 0 : i32
    %c0_i32_1 = arith.constant 0 : i32
    return %c0_i32, %c0_i32_0 : i32, i32
  }
  func.func @transform_3(%arg0: i32) -> (i32, i32) {
    %c0_i32 = arith.constant 0 : i32
    %c0_i32_0 = arith.constant 0 : i32
    %c0_i32_1 = arith.constant 0 : i32
    return %c0_i32, %c0_i32_0 : i32, i32
  }
  func.func @transform_4(%arg0: i32) -> (i32, i32) {
    %c0_i32 = arith.constant 0 : i32
    %c0_i32_0 = arith.constant 0 : i32
    %c0_i32_1 = arith.constant 0 : i32
    return %c0_i32, %c0_i32_0 : i32, i32
  }
  func.func @transform_5(%arg0: i32) -> (i32, i32) {
    %c0_i32 = arith.constant 0 : i32
    %c0_i32_0 = arith.constant 0 : i32
    %c0_i32_1 = arith.constant 0 : i32
    return %c0_i32, %c0_i32_0 : i32, i32
  }
  func.func @transform_6(%arg0: i32) -> (i32, i32) {
    %c0_i32 = arith.constant 0 : i32
    %c0_i32_0 = arith.constant 0 : i32
    %c0_i32_1 = arith.constant 0 : i32
    return %c0_i32, %c0_i32_0 : i32, i32
  }
  func.func @transform_7(%arg0: i32) -> (i32, i32) {
    %c0_i32 = arith.constant 0 : i32
    %c0_i32_0 = arith.constant 0 : i32
    return %arg0, %c0_i32 : i32, i32
  }
}

</mosaic_0001>

<bundles_post_ra>
// kernel: tpu_custom_call.1
= control target key start
LH: loop header
LB: loop body
LE: loop exit
PB: predicated region body
PF: predicated region fallthrough
CT: control target
= control target key end

     0   :  { %12 = vsyncpa [#allocation3], 0  ;;  %s763_s0 = inlined_call_operand.vmem [shape: f32[8,32], index: 0, kind: input, shape index: {}]   ;;  %s764_s1 = inlined_call_operand.hbm [shape: f32[32,128], index: 1, kind: input, shape index: {}]   ;;  %s765_s2 = inlined_call_operand.vmem [shape: f32[1,128], index: 2, kind: input, shape index: {}]   ;;  %s766_s3 = inlined_call_operand.vmem [shape: f32[128,128], index: 3, kind: input, shape index: {}]   ;;  %s767_s4 = inlined_call_operand.vmem [shape: f32[1,128], index: 4, kind: input, shape index: {}]   ;;  %s768_s5 = inlined_call_operand.vmem [shape: f32[128,16], index: 5, kind: input, shape index: {}]   ;;  %s769_s6 = inlined_call_operand.vmem [shape: f32[1,16], index: 6, kind: input, shape index: {}]   ;;  %s770_s7 = inlined_call_operand.hbm [shape: f32[8,16], index: 7, kind: output, shape index: {}]  }
   0x1   :  { %13 = vsyncpa [#allocation4], 0  ;;  %s563_s24 = smov [#allocation2]   ;;  %s515_s28 = scalar_lea.hbm %s764_s1, 512 }
   0x2   :  { %s21_s25 = sshll.u32 %s563_s24, 4  ;;  %p516_p0 = scmp.ne.s32.totalorder %s764_s1, %s515_s28  ;;  %s22_s25 = int_to_ptr.vmem [resolvable:$true] %s21_s25 }
   0x3   :  { %p519_p1 = scmp.lt.u32.totalorder %s515_s28, %s764_s1 }
   0x5   :  { %p521_p2 = pnand %p519_p1, %p516_p0 }
   0x7   :  { %524 = shalt.err (!%p521_p2)
}
   0x8   :  { %s525_s10 = scalar_lea.vmem %s22_s25, 512  ;;  %p530_p4 = scmp.lt.s32.totalorder %s22_s25, %s22_s25 }
   0x9   :  { %p526_p3 = scmp.ne.s32.totalorder %s22_s25, %s525_s10  ;;  %p531_p5 = scmp.lt.s32.totalorder %s525_s10, %s525_s10 }
   0xb   :  { %p532_p6 = por %p531_p5, %p530_p4 }
   0xd   :  { %p533_p7 = pnand %p532_p6, %p526_p3 }
   0xf   :  { %536 = shalt.err (!%p533_p7)
}
  0x10   :  { %s564_s11 = smov 128   ;;  %s565_s12 = smov 8  }
  0x11   :  { %27 = dma.hbm_to_vmem [thread:$0]  %s764_s1, 512, %s22_s25, [#allocation3], %s564_s11, %s564_s11, %s565_s12  }
  0x12   :  { %559 = dma.done.wait [#allocation3], 512  }
  0x13   :  { %560 = vsyncadd [#allocation3], 4294966784  ;;  %v566_v0 = vmov 0.0|0.0   ;;  %vm567_vm0 = vmmov 0   ;;  %v568_v1 = vmov 0.0   ;;  %v42_v2 = vld [vmem:[#allocation2] sm:$0xff] }
  0x14   :  { %454 = vmatprep.subr.bf16.mxu0 %v566_v0  ;;  %381 = vmatprep.mubr.msk.f32.mxu0 %vm567_vm0, %v568_v1  ;;  %v43_v3 = vld [vmem:[#allocation2 + $0x8] sm:$0xff]  ;;  %v44_v4 = vld [vmem:[#allocation2 + $0x10] sm:$0xff]  ;;  %v45_v6 = vld [vmem:[#allocation2 + $0x18] sm:$0xff]  ;;  %vm53_vm1 = vcmask 261120   ;;  %s569_s9 = smov [#allocation5]   ;;  %vm313_vm2 = vcmask 130048  }
  0x15   :  { %460 = vmatprep.subr.bf16.mxu1 %v566_v0  ;;  %416 = vmatprep.mubr.msk.f32.mxu1 %vm567_vm0, %v568_v1  ;;  %v455_v5 = vpack.c.bf16 %v43_v3, %v42_v2  ;;  %v127_v7 = vld [vmem:[%s766_s3] sm:$0xff]  ;;  %v128_v8 = vld [vmem:[%s766_s3 + $0x8] sm:$0xff]  ;;  %v129_v9 = vld [vmem:[%s766_s3 + $0x10] sm:$0xff]  ;;  %v458_v11 = vpack.c.bf16 %v45_v6, %v44_v4  ;;  %s321_s10 = sshll.u32 %s569_s9, 4  ;;  %s322_s10 = int_to_ptr.vmem [resolvable:$true] %s321_s10 }
  0x16   :  { %v130_v10 = vld [vmem:[%s766_s3 + $0x18] sm:$0xff]  ;;  %v461_v12 = vpack.c.bf16 %v128_v8, %v127_v7  ;;  %v131_v14 = vld [vmem:[%s766_s3 + $0x20] sm:$0xff]  ;;  %v132_v15 = vld [vmem:[%s766_s3 + $0x28] sm:$0xff]  ;;  %p542_p9 = scmp.lt.s32.totalorder %s322_s10, %s322_s10 }
  0x17   :  { %456 = vmatpush3.bf16.msra.mxu0 %v455_v5  ;;  %v464_v13 = vpack.c.bf16 %v130_v10, %v129_v9  ;;  %v41_v16 = vld [vmem:[%s763_s0] sm:$0xff]  ;;  %v467_v17 = vpack.c.bf16 %v132_v15, %v131_v14  ;;  %v133_v18 = vld [vmem:[%s766_s3 + $0x30] sm:$0xff]  ;;  %v134_v19 = vld [vmem:[%s766_s3 + $0x38] sm:$0xff] }
  0x18   :  { %457 = vmatprep.subr.bf16.mxu0 %v566_v0  ;;  %462 = vmatpush3.bf16.msra.mxu1 %v461_v12  ;;  %v470_v20 = vpack.c.bf16 %v134_v19, %v133_v18  ;;  %v135_v21 = vld [vmem:[%s766_s3 + $0x40] sm:$0xff]  ;;  %v136_v22 = vld [vmem:[%s766_s3 + $0x48] sm:$0xff]  ;;  %v137_v24 = vld [vmem:[%s766_s3 + $0x50] sm:$0xff] }
  0x19   :  { %463 = vmatprep.subr.bf16.mxu1 %v566_v0  ;;  %v473_v23 = vpack.c.bf16 %v136_v22, %v135_v21  ;;  %v138_v25 = vld [vmem:[%s766_s3 + $0x58] sm:$0xff]  ;;  %v139_v27 = vld [vmem:[%s766_s3 + $0x60] sm:$0xff]  ;;  %v140_v28 = vld [vmem:[%s766_s3 + $0x68] sm:$0xff] }
  0x1a   :  { %v476_v26 = vpack.c.bf16 %v138_v25, %v137_v24  ;;  %v479_v29 = vpack.c.bf16 %v140_v28, %v139_v27  ;;  %v141_v30 = vld [vmem:[%s766_s3 + $0x70] sm:$0xff]  ;;  %v142_v31 = vld [vmem:[%s766_s3 + $0x78] sm:$0xff]  ;;  %v220_v33 = vld [vmem:[%s768_s5] sm:$0xff] }
  0x1b   :  { %459 = vmatpush3.bf16.msra.mxu0 %v458_v11  ;;  %v482_v32 = vpack.c.bf16 %v142_v31, %v141_v30  ;;  %v221_v34 = vld [vmem:[%s768_s5 + $0x8] sm:$0xff]  ;;  %v222_v35 = vld [vmem:[%s768_s5 + $0x10] sm:$0xff]  ;;  %v223_v37 = vld [vmem:[%s768_s5 + $0x18] sm:$0xff] }
  0x1c   :  { %484 = vmatprep.subr.bf16.mxu0 %v566_v0  ;;  %465 = vmatpush3.bf16.msra.mxu1 %v464_v13  ;;  %v485_v36 = vpack.c.bf16 %v221_v34, %v220_v33  ;;  %v488_v38 = vpack.c.bf16 %v223_v37, %v222_v35  ;;  %v224_v39 = vld [vmem:[%s768_s5 + $0x20] sm:$0xff]  ;;  %v225_v40 = vld [vmem:[%s768_s5 + $0x28] sm:$0xff]  ;;  %v226_v42 = vld [vmem:[%s768_s5 + $0x30] sm:$0xff] }
  0x1d   :  { %466 = vmatprep.subr.bf16.mxu1 %v566_v0  ;;  %v491_v41 = vpack.c.bf16 %v225_v40, %v224_v39  ;;  %v227_v43 = vld [vmem:[%s768_s5 + $0x38] sm:$0xff]  ;;  %v228_v45 = vld [vmem:[%s768_s5 + $0x40] sm:$0xff]  ;;  %v229_v46 = vld [vmem:[%s768_s5 + $0x48] sm:$0xff] }
  0x1e   :  { %382 = vmatmul.mubr.msk.f32.vlgmr.msra.gmra.mrb[0].mxu0 %vm53_vm1, %v41_v16  ;;  %v494_v44 = vpack.c.bf16 %v227_v43, %v226_v42  ;;  %v497_v47 = vpack.c.bf16 %v229_v46, %v228_v45  ;;  %v230_v48 = vld [vmem:[%s768_s5 + $0x50] sm:$0xff]  ;;  %v231_v49 = vld [vmem:[%s768_s5 + $0x58] sm:$0xff]  ;;  %v232_v51 = vld [vmem:[%s768_s5 + $0x60] sm:$0xff] }
  0x1f   :  { %451 = vmatprep.mubr.msk.f32.mxu0 %vm567_vm0, %v568_v1  ;;  %486 = vmatpush3.bf16.msra.mxu0 %v485_v36  ;;  %v500_v50 = vpack.c.bf16 %v231_v49, %v230_v48  ;;  %v233_v52 = vld [vmem:[%s768_s5 + $0x68] sm:$0xff]  ;;  %v330_v54 = vld [vmem:[%s765_s2] ss:$0 sm:$0xff]  ;;  %v234_v58 = vld [vmem:[%s768_s5 + $0x70] sm:$0xff] }
  0x20   :  { %468 = vmatpush3.bf16.msra.mxu1 %v467_v17  ;;  %487 = vmatprep.subr.bf16.mxu0 %v566_v0  ;;  %v503_v53 = vpack.c.bf16 %v233_v52, %v232_v51  ;;  %v235_v59 = vld [vmem:[%s768_s5 + $0x78] sm:$0xff]  ;;  %v332_v61 = vld [vmem:[%s767_s4] ss:$0 sm:$0xff]  ;;  %s537_s5 = scalar_lea.vmem %s322_s10, 128 }
  0x21   :  { %469 = vmatprep.subr.bf16.mxu1 %v566_v0  ;;  %v506_v60 = vpack.c.bf16 %v235_v59, %v234_v58  ;;  %v333_v1 = vld [vmem:[%s769_s6] ss:$0 sm:$0xff]  ;;  %p538_p8 = scmp.ne.s32.totalorder %s322_s10, %s537_s5  ;;  %p543_p10 = scmp.lt.s32.totalorder %s537_s5, %s537_s5 }
  0x23   :  { %489 = vmatpush3.bf16.msra.mxu0 %v488_v38  ;;  %p544_p11 = por %p543_p10, %p542_p9 }
  0x24   :  { %471 = vmatpush3.bf16.msra.mxu1 %v470_v20  ;;  %490 = vmatprep.subr.bf16.mxu0 %v566_v0 }
  0x25   :  { %472 = vmatprep.subr.bf16.mxu1 %v566_v0  ;;  %p545_p12 = pnand %p544_p11, %p538_p8 }
  0x27   :  { %492 = vmatpush3.bf16.msra.mxu0 %v491_v41 }
  0x28   :  { %474 = vmatpush3.bf16.msra.mxu1 %v473_v23  ;;  %493 = vmatprep.subr.bf16.mxu0 %v566_v0 }
  0x29   :  { %475 = vmatprep.subr.bf16.mxu1 %v566_v0 }
  0x2b   :  { %495 = vmatpush3.bf16.msra.mxu0 %v494_v44 }
  0x2c   :  { %477 = vmatpush3.bf16.msra.mxu1 %v476_v26  ;;  %496 = vmatprep.subr.bf16.mxu0 %v566_v0 }
  0x2d   :  { %478 = vmatprep.subr.bf16.mxu1 %v566_v0 }
  0x2f   :  { %498 = vmatpush3.bf16.msra.mxu0 %v497_v47 }
  0x30   :  { %480 = vmatpush3.bf16.msra.mxu1 %v479_v29  ;;  %499 = vmatprep.subr.bf16.mxu0 %v566_v0 }
  0x31   :  { %481 = vmatprep.subr.bf16.mxu1 %v566_v0 }
  0x33   :  { %501 = vmatpush3.bf16.msra.mxu0 %v500_v50 }
  0x34   :  { %483 = vmatpush3.bf16.msra.mxu1 %v482_v32  ;;  %502 = vmatprep.subr.bf16.mxu0 %v566_v0 }
  0x37   :  { %504 = vmatpush3.bf16.msra.mxu0 %v503_v53 }
  0x38   :  { %505 = vmatprep.subr.bf16.mxu0 %v566_v0 }
  0x3b   :  { %507 = vmatpush3.bf16.msra.mxu0 %v506_v60 }
  0xf1   :  { %v123_v55 = vpop.f32.mrb[0].mxu0 }
  0xf2   :  { %v124_v56 = vadd.f32 %v330_v54, %v123_v55  ;;  %v383_v57 = vpop.f32.mrb[1].mxu0 }
  0xf4   :  { %417 = vmatmul.mubr.f32.vlgmr.msra.gmra.mrb[0].mxu1 %v124_v56 }
 0x1c7   :  { %v216_v62 = vpop.f32.mrb[0].mxu1 }
 0x1c8   :  { %v217_v63 = vadd.f32 %v332_v61, %v216_v62  ;;  %v418_v0 = vpop.f32.mrb[1].mxu1 }
 0x1ca   :  { %452 = vmatmul.mubr.f32.vlgmr.msra.gmra.mrb[2].mxu0 %v217_v63 }
 0x29d   :  { %v309_v2 = vpop.f32.mrb[2].mxu0 }
 0x29e   :  { %v310_v3 = vadd.f32 %v333_v1, %v309_v2  ;;  %v453_v4 = vpop.f32.mrb[3].mxu0 }
 0x2a0   :  { %314 = vst.msk [vmem:[#allocation5] sm:$0xff] %vm313_vm2, %v310_v3 }
 0x2a1   :  { %548 = shalt.err (!%p545_p12)
}
 0x2a2   :  { %s549_s12 = scalar_lea.hbm %s770_s7, 128 }
 0x2a3   :  { %p550_p13 = scmp.ne.s32.totalorder %s770_s7, %s549_s12  ;;  %p553_p0 = scmp.lt.u32.totalorder %s549_s12, %s770_s7 }
 0x2a5   :  { %p555_p1 = pnand %p553_p0, %p550_p13 }
 0x2a7   :  { %558 = shalt.err (!%p555_p1)
}
 0x2a8   :  { %324 = dma.vmem_to_hbm [thread:$0]  %s322_s10, 128, %s770_s7, [#allocation4]  }
 0x2a9   :  { %561 = dma.done.wait [#allocation4], 128  }
 0x2aa   :  { %562 = vsyncadd [#allocation4], 4294967168 }
 0x2ab   :  { %328 = vsyncpa [#allocation3], 1 }
 0x2ac   :  { %329 = vsyncpa [#allocation4], 1 }

// kernel: tpu_custom_call.1
= control target key start
LH: loop header
LB: loop body
LE: loop exit
PB: predicated region body
PF: predicated region fallthrough
CT: control target
= control target key end

     0   :  { %12 = vsyncpa [#allocation3], 0  ;;  %s763_s0 = inlined_call_operand.vmem [shape: f32[8,32], index: 0, kind: input, shape index: {}]   ;;  %s764_s1 = inlined_call_operand.hbm [shape: f32[32,128], index: 1, kind: input, shape index: {}]   ;;  %s765_s2 = inlined_call_operand.vmem [shape: f32[1,128], index: 2, kind: input, shape index: {}]   ;;  %s766_s3 = inlined_call_operand.vmem [shape: f32[128,128], index: 3, kind: input, shape index: {}]   ;;  %s767_s4 = inlined_call_operand.vmem [shape: f32[1,128], index: 4, kind: input, shape index: {}]   ;;  %s768_s5 = inlined_call_operand.vmem [shape: f32[128,16], index: 5, kind: input, shape index: {}]   ;;  %s769_s6 = inlined_call_operand.vmem [shape: f32[1,16], index: 6, kind: input, shape index: {}]   ;;  %s770_s7 = inlined_call_operand.hbm [shape: f32[8,16], index: 7, kind: output, shape index: {}]  }
   0x1   :  { %13 = vsyncpa [#allocation4], 0  ;;  %s563_s24 = smov [#allocation2]   ;;  %s515_s28 = scalar_lea.hbm %s764_s1, 512 }
   0x2   :  { %s21_s25 = sshll.u32 %s563_s24, 4  ;;  %p516_p0 = scmp.ne.s32.totalorder %s764_s1, %s515_s28  ;;  %s22_s25 = int_to_ptr.vmem [resolvable:$true] %s21_s25 }
   0x3   :  { %p519_p1 = scmp.lt.u32.totalorder %s515_s28, %s764_s1 }
   0x5   :  { %p521_p2 = pnand %p519_p1, %p516_p0 }
   0x7   :  { %524 = shalt.err (!%p521_p2)
}
   0x8   :  { %s525_s10 = scalar_lea.vmem %s22_s25, 512  ;;  %p530_p4 = scmp.lt.s32.totalorder %s22_s25, %s22_s25 }
   0x9   :  { %p526_p3 = scmp.ne.s32.totalorder %s22_s25, %s525_s10  ;;  %p531_p5 = scmp.lt.s32.totalorder %s525_s10, %s525_s10 }
   0xb   :  { %p532_p6 = por %p531_p5, %p530_p4 }
   0xd   :  { %p533_p7 = pnand %p532_p6, %p526_p3 }
   0xf   :  { %536 = shalt.err (!%p533_p7)
}
  0x10   :  { %s564_s11 = smov 128   ;;  %s565_s12 = smov 8  }
  0x11   :  { %27 = dma.hbm_to_vmem [thread:$0]  %s764_s1, 512, %s22_s25, [#allocation3], %s564_s11, %s564_s11, %s565_s12  }
  0x12   :  { %559 = dma.done.wait [#allocation3], 512  }
  0x13   :  { %560 = vsyncadd [#allocation3], 4294966784  ;;  %v566_v0 = vmov 0.0|0.0   ;;  %vm567_vm0 = vmmov 0   ;;  %v568_v1 = vmov 0.0   ;;  %v42_v2 = vld [vmem:[#allocation2] sm:$0xff] }
  0x14   :  { %454 = vmatprep.subr.bf16.mxu0 %v566_v0  ;;  %381 = vmatprep.mubr.msk.f32.mxu0 %vm567_vm0, %v568_v1  ;;  %v43_v3 = vld [vmem:[#allocation2 + $0x8] sm:$0xff]  ;;  %v44_v4 = vld [vmem:[#allocation2 + $0x10] sm:$0xff]  ;;  %v45_v6 = vld [vmem:[#allocation2 + $0x18] sm:$0xff]  ;;  %vm53_vm1 = vcmask 261120   ;;  %s569_s9 = smov [#allocation5]   ;;  %vm313_vm2 = vcmask 130048  }
  0x15   :  { %460 = vmatprep.subr.bf16.mxu1 %v566_v0  ;;  %416 = vmatprep.mubr.msk.f32.mxu1 %vm567_vm0, %v568_v1  ;;  %v455_v5 = vpack.c.bf16 %v43_v3, %v42_v2  ;;  %v127_v7 = vld [vmem:[%s766_s3] sm:$0xff]  ;;  %v128_v8 = vld [vmem:[%s766_s3 + $0x8] sm:$0xff]  ;;  %v129_v9 = vld [vmem:[%s766_s3 + $0x10] sm:$0xff]  ;;  %v458_v11 = vpack.c.bf16 %v45_v6, %v44_v4  ;;  %s321_s10 = sshll.u32 %s569_s9, 4  ;;  %s322_s10 = int_to_ptr.vmem [resolvable:$true] %s321_s10 }
  0x16   :  { %v130_v10 = vld [vmem:[%s766_s3 + $0x18] sm:$0xff]  ;;  %v461_v12 = vpack.c.bf16 %v128_v8, %v127_v7  ;;  %v131_v14 = vld [vmem:[%s766_s3 + $0x20] sm:$0xff]  ;;  %v132_v15 = vld [vmem:[%s766_s3 + $0x28] sm:$0xff]  ;;  %p542_p9 = scmp.lt.s32.totalorder %s322_s10, %s322_s10 }
  0x17   :  { %456 = vmatpush3.bf16.msra.mxu0 %v455_v5  ;;  %v464_v13 = vpack.c.bf16 %v130_v10, %v129_v9  ;;  %v41_v16 = vld [vmem:[%s763_s0] sm:$0xff]  ;;  %v467_v17 = vpack.c.bf16 %v132_v15, %v131_v14  ;;  %v133_v18 = vld [vmem:[%s766_s3 + $0x30] sm:$0xff]  ;;  %v134_v19 = vld [vmem:[%s766_s3 + $0x38] sm:$0xff] }
  0x18   :  { %457 = vmatprep.subr.bf16.mxu0 %v566_v0  ;;  %462 = vmatpush3.bf16.msra.mxu1 %v461_v12  ;;  %v470_v20 = vpack.c.bf16 %v134_v19, %v133_v18  ;;  %v135_v21 = vld [vmem:[%s766_s3 + $0x40] sm:$0xff]  ;;  %v136_v22 = vld [vmem:[%s766_s3 + $0x48] sm:$0xff]  ;;  %v137_v24 = vld [vmem:[%s766_s3 + $0x50] sm:$0xff] }
  0x19   :  { %463 = vmatprep.subr.bf16.mxu1 %v566_v0  ;;  %v473_v23 = vpack.c.bf16 %v136_v22, %v135_v21  ;;  %v138_v25 = vld [vmem:[%s766_s3 + $0x58] sm:$0xff]  ;;  %v139_v27 = vld [vmem:[%s766_s3 + $0x60] sm:$0xff]  ;;  %v140_v28 = vld [vmem:[%s766_s3 + $0x68] sm:$0xff] }
  0x1a   :  { %v476_v26 = vpack.c.bf16 %v138_v25, %v137_v24  ;;  %v479_v29 = vpack.c.bf16 %v140_v28, %v139_v27  ;;  %v141_v30 = vld [vmem:[%s766_s3 + $0x70] sm:$0xff]  ;;  %v142_v31 = vld [vmem:[%s766_s3 + $0x78] sm:$0xff]  ;;  %v220_v33 = vld [vmem:[%s768_s5] sm:$0xff] }
  0x1b   :  { %459 = vmatpush3.bf16.msra.mxu0 %v458_v11  ;;  %v482_v32 = vpack.c.bf16 %v142_v31, %v141_v30  ;;  %v221_v34 = vld [vmem:[%s768_s5 + $0x8] sm:$0xff]  ;;  %v222_v35 = vld [vmem:[%s768_s5 + $0x10] sm:$0xff]  ;;  %v223_v37 = vld [vmem:[%s768_s5 + $0x18] sm:$0xff] }
  0x1c   :  { %484 = vmatprep.subr.bf16.mxu0 %v566_v0  ;;  %465 = vmatpush3.bf16.msra.mxu1 %v464_v13  ;;  %v485_v36 = vpack.c.bf16 %v221_v34, %v220_v33  ;;  %v488_v38 = vpack.c.bf16 %v223_v37, %v222_v35  ;;  %v224_v39 = vld [vmem:[%s768_s5 + $0x20] sm:$0xff]  ;;  %v225_v40 = vld [vmem:[%s768_s5 + $0x28] sm:$0xff]  ;;  %v226_v42 = vld [vmem:[%s768_s5 + $0x30] sm:$0xff] }
  0x1d   :  { %466 = vmatprep.subr.bf16.mxu1 %v566_v0  ;;  %v491_v41 = vpack.c.bf16 %v225_v40, %v224_v39  ;;  %v227_v43 = vld [vmem:[%s768_s5 + $0x38] sm:$0xff]  ;;  %v228_v45 = vld [vmem:[%s768_s5 + $0x40] sm:$0xff]  ;;  %v229_v46 = vld [vmem:[%s768_s5 + $0x48] sm:$0xff] }
  0x1e   :  { %382 = vmatmul.mubr.msk.f32.vlgmr.msra.gmra.mrb[0].mxu0 %vm53_vm1, %v41_v16  ;;  %v494_v44 = vpack.c.bf16 %v227_v43, %v226_v42  ;;  %v497_v47 = vpack.c.bf16 %v229_v46, %v228_v45  ;;  %v230_v48 = vld [vmem:[%s768_s5 + $0x50] sm:$0xff]  ;;  %v231_v49 = vld [vmem:[%s768_s5 + $0x58] sm:$0xff]  ;;  %v232_v51 = vld [vmem:[%s768_s5 + $0x60] sm:$0xff] }
  0x1f   :  { %451 = vmatprep.mubr.msk.f32.mxu0 %vm567_vm0, %v568_v1  ;;  %486 = vmatpush3.bf16.msra.mxu0 %v485_v36  ;;  %v500_v50 = vpack.c.bf16 %v231_v49, %v230_v48  ;;  %v233_v52 = vld [vmem:[%s768_s5 + $0x68] sm:$0xff]  ;;  %v330_v54 = vld [vmem:[%s765_s2] ss:$0 sm:$0xff]  ;;  %v234_v58 = vld [vmem:[%s768_s5 + $0x70] sm:$0xff] }
  0x20   :  { %468 = vmatpush3.bf16.msra.mxu1 %v467_v17  ;;  %487 = vmatprep.subr.bf16.mxu0 %v566_v0  ;;  %v503_v53 = vpack.c.bf16 %v233_v52, %v232_v51  ;;  %v235_v59 = vld [vmem:[%s768_s5 + $0x78] sm:$0xff]  ;;  %v332_v61 = vld [vmem:[%s767_s4] ss:$0 sm:$0xff]  ;;  %s537_s5 = scalar_lea.vmem %s322_s10, 128 }
  0x21   :  { %469 = vmatprep.subr.bf16.mxu1 %v566_v0  ;;  %v506_v60 = vpack.c.bf16 %v235_v59, %v234_v58  ;;  %v333_v1 = vld [vmem:[%s769_s6] ss:$0 sm:$0xff]  ;;  %p538_p8 = scmp.ne.s32.totalorder %s322_s10, %s537_s5  ;;  %p543_p10 = scmp.lt.s32.totalorder %s537_s5, %s537_s5 }
  0x23   :  { %489 = vmatpush3.bf16.msra.mxu0 %v488_v38  ;;  %p544_p11 = por %p543_p10, %p542_p9 }
  0x24   :  { %471 = vmatpush3.bf16.msra.mxu1 %v470_v20  ;;  %490 = vmatprep.subr.bf16.mxu0 %v566_v0 }
  0x25   :  { %472 = vmatprep.subr.bf16.mxu1 %v566_v0  ;;  %p545_p12 = pnand %p544_p11, %p538_p8 }
  0x27   :  { %492 = vmatpush3.bf16.msra.mxu0 %v491_v41 }
  0x28   :  { %474 = vmatpush3.bf16.msra.mxu1 %v473_v23  ;;  %493 = vmatprep.subr.bf16.mxu0 %v566_v0 }
  0x29   :  { %475 = vmatprep.subr.bf16.mxu1 %v566_v0 }
  0x2b   :  { %495 = vmatpush3.bf16.msra.mxu0 %v494_v44 }
  0x2c   :  { %477 = vmatpush3.bf16.msra.mxu1 %v476_v26  ;;  %496 = vmatprep.subr.bf16.mxu0 %v566_v0 }
  0x2d   :  { %478 = vmatprep.subr.bf16.mxu1 %v566_v0 }
  0x2f   :  { %498 = vmatpush3.bf16.msra.mxu0 %v497_v47 }
  0x30   :  { %480 = vmatpush3.bf16.msra.mxu1 %v479_v29  ;;  %499 = vmatprep.subr.bf16.mxu0 %v566_v0 }
  0x31   :  { %481 = vmatprep.subr.bf16.mxu1 %v566_v0 }
  0x33   :  { %501 = vmatpush3.bf16.msra.mxu0 %v500_v50 }
  0x34   :  { %483 = vmatpush3.bf16.msra.mxu1 %v482_v32  ;;  %502 = vmatprep.subr.bf16.mxu0 %v566_v0 }
  0x37   :  { %504 = vmatpush3.bf16.msra.mxu0 %v503_v53 }
  0x38   :  { %505 = vmatprep.subr.bf16.mxu0 %v566_v0 }
  0x3b   :  { %507 = vmatpush3.bf16.msra.mxu0 %v506_v60 }
  0xf1   :  { %v123_v55 = vpop.f32.mrb[0].mxu0 }
  0xf2   :  { %v124_v56 = vadd.f32 %v330_v54, %v123_v55  ;;  %v383_v57 = vpop.f32.mrb[1].mxu0 }
  0xf4   :  { %417 = vmatmul.mubr.f32.vlgmr.msra.gmra.mrb[0].mxu1 %v124_v56 }
 0x1c7   :  { %v216_v62 = vpop.f32.mrb[0].mxu1 }
 0x1c8   :  { %v217_v63 = vadd.f32 %v332_v61, %v216_v62  ;;  %v418_v0 = vpop.f32.mrb[1].mxu1 }
 0x1ca   :  { %452 = vmatmul.mubr.f32.vlgmr.msra.gmra.mrb[2].mxu0 %v217_v63 }
 0x29d   :  { %v309_v2 = vpop.f32.mrb[2].mxu0 }
 0x29e   :  { %v310_v3 = vadd.f32 %v333_v1, %v309_v2  ;;  %v453_v4 = vpop.f32.mrb[3].mxu0 }
 0x2a0   :  { %314 = vst.msk [vmem:[#allocation5] sm:$0xff] %vm313_vm2, %v310_v3 }
 0x2a1   :  { %548 = shalt.err (!%p545_p12)
}
 0x2a2   :  { %s549_s12 = scalar_lea.hbm %s770_s7, 128 }
 0x2a3   :  { %p550_p13 = scmp.ne.s32.totalorder %s770_s7, %s549_s12  ;;  %p553_p0 = scmp.lt.u32.totalorder %s549_s12, %s770_s7 }
 0x2a5   :  { %p555_p1 = pnand %p553_p0, %p550_p13 }
 0x2a7   :  { %558 = shalt.err (!%p555_p1)
}
 0x2a8   :  { %324 = dma.vmem_to_hbm [thread:$0]  %s322_s10, 128, %s770_s7, [#allocation4]  }
 0x2a9   :  { %561 = dma.done.wait [#allocation4], 128  }
 0x2aa   :  { %562 = vsyncadd [#allocation4], 4294967168 }
 0x2ab   :  { %328 = vsyncpa [#allocation3], 1 }
 0x2ac   :  { %329 = vsyncpa [#allocation4], 1 }

</bundles_post_ra>
